<compile_context>
chip_gen: v5e
topology: v5e:2x2
jax: 0.10.0
libtpu: 0.0.40
codegen_flags: <defaults>
</compile_context>

<pallas_src>
import functools

import jax
import jax.numpy as jnp
from jax.experimental import pallas as pl
from jax.experimental.pallas import tpu as pltpu

LN_EPS = 1e-5
OB_CLAMP = 5.0

# Row layout of the packed parameter-vector slab (shape (8, W)).
_ROW_B0, _ROW_G0, _ROW_BE0 = 0, 1, 2         # ShallowMLP bias / LN gamma / LN beta
_ROW_BPV, _ROW_GPV, _ROW_BEPV = 3, 4, 5      # fused [policy|value] bias / gamma / beta
_ROW_BHEAD = 6                                # fused head bias [bph | bvh | 0-pad]
_N_VEC_ROWS = 8                               # padded to a full sublane tile


def _round_up(x, m):
    return ((x + m - 1) // m) * m


def _layernorm(x, gamma, beta):
    # PyTorch nn.LayerNorm over the last dim, biased variance, eps=1e-5.
    mu = jnp.mean(x, axis=-1, keepdims=True)
    xc = x - mu
    var = jnp.mean(xc * xc, axis=-1, keepdims=True)
    inv = jax.lax.rsqrt(var + LN_EPS)
    return xc * inv * gamma + beta


def _segmented_layernorm_tanh(hv, gamma, beta, hid):
    """Two independent LayerNorms over lanes [0,H) and [H,2H) of hv (TB, 2H),
    computed in place with lane masks (no sub-lane slices / concats), followed
    by a single tanh.  1/H is exact for H a power of two, so this matches the
    unfused reference bit-for-bit at H=32."""
    two_h = hv.shape[-1]
    lane = jax.lax.broadcasted_iota(jnp.int32, (1, two_h), 1)
    is_p = lane < hid
    inv_h = 1.0 / hid

    mu_p = jnp.sum(jnp.where(is_p, hv, 0.0), axis=-1, keepdims=True) * inv_h
    mu_v = jnp.sum(jnp.where(is_p, 0.0, hv), axis=-1, keepdims=True) * inv_h
    xc = hv - jnp.where(is_p, mu_p, mu_v)

    xc2 = xc * xc
    var_p = jnp.sum(jnp.where(is_p, xc2, 0.0), axis=-1, keepdims=True) * inv_h
    var_v = jnp.sum(jnp.where(is_p, 0.0, xc2), axis=-1, keepdims=True) * inv_h
    # One rsqrt pass over the (TB, 2H) tensor covers both halves.
    inv = jax.lax.rsqrt(jnp.where(is_p, var_p, var_v) + LN_EPS)

    return jnp.tanh(xc * inv * gamma + beta)


def catpolicy_kernel(ob_ref, stats_ref, w0_ref, wpv_ref, whead_ref, vec_ref,
                     out_ref):
    hid = w0_ref.shape[1]
    a1p = whead_ref.shape[1]

    # Hoist all tiny parameter rows once (JAX does not CSE broadcasts).
    b0   = vec_ref[_ROW_B0:_ROW_B0 + 1, :hid]
    g0   = vec_ref[_ROW_G0:_ROW_G0 + 1, :hid]
    be0  = vec_ref[_ROW_BE0:_ROW_BE0 + 1, :hid]
    bpv  = vec_ref[_ROW_BPV:_ROW_BPV + 1, :2 * hid]
    gpv  = vec_ref[_ROW_GPV:_ROW_GPV + 1, :2 * hid]
    bepv = vec_ref[_ROW_BEPV:_ROW_BEPV + 1, :2 * hid]
    bhd  = vec_ref[_ROW_BHEAD:_ROW_BHEAD + 1, :a1p]

    # Standardize + clamp: one exact reciprocal of the (1, D_ob) std row, then
    # a broadcast multiply over the batch tile.
    mean = stats_ref[0:1, :]
    inv_std = pl.reciprocal(stats_ref[1:2, :], approx=False)
    x = jnp.clip((ob_ref[...] - mean) * inv_std, -OB_CLAMP, OB_CLAMP)

    # Perception stack (ShallowMLP): Linear -> LayerNorm -> Tanh.
    h = jnp.dot(x, w0_ref[...], preferred_element_type=jnp.float32) + b0
    h = jnp.tanh(_layernorm(h, g0, be0))
    # TODO(synk): if a bundle dump shows XLU reductions saturating, fold the
    # LayerNorm means into extra MXU columns of w0/w_pv (free padded lanes).

    # Fused policy|value hidden layer: one (H, 2H) matmul, then masked
    # segmented LayerNorm + tanh on the full (TB, 2H) tensor (no slices/concat).
    hv = jnp.dot(h, wpv_ref[...], preferred_element_type=jnp.float32) + bpv
    act = _segmented_layernorm_tanh(hv, gpv, bepv, hid)          # (TB, 2H)

    # Fused block-diagonal head: one (2H, A1pad) matmul produces logits and
    # value in a single output slab.
    out_ref[...] = (
        jnp.dot(act, whead_ref[...], preferred_element_type=jnp.float32) + bhd
    )


def _pick_tb(B):
    """Batch tile: overhead-dominated kernel, so maximize the tile (cap 2048,
    multiple of 8); for B > 1024 ensure the grid has >= 2 steps so both v7x
    TensorCores engage under dimension_semantics=("parallel",)."""
    cap = 2048
    if B <= 1024:
        return B
    return min(_round_up(pl.cdiv(B, 2), 8), cap)


def _pick_head_lanes(ac_dim):
    """Output slab width.  v5e (~0.8 TB/s HBM): writeback of a padded 128-lane
    f32 slab dominates -> use the minimal multiple-of-8 width (legal because it
    equals the full output array dim).  v6e/v7x: keep the lane-dense 128-wide
    slab (unmasked vst, cheap stores at their HBM bandwidth)."""
    a1 = ac_dim + 1
    narrow = _round_up(a1, 8)
    dense = _round_up(a1, 128)
    try:
        kind = jax.devices()[0].device_kind.lower()
    except Exception:
        kind = ""
    return narrow if "v5" in kind else dense


def catpolicy_forward(ob, packed, *, ac_dim):
    """Single pallas_call; returns (ac_logits, value)."""
    stats, w0, w_pv, w_head, vecs = packed
    B, d_ob = ob.shape
    hid = w0.shape[1]
    a1p = w_head.shape[1]

    tb = _pick_tb(B)
    grid = (pl.cdiv(B, tb),)
    const = lambda i: (0, 0)

    # Advisory cost so XLA schedules the custom call sensibly.
    param_bytes = 4 * sum(int(a.size) for a in (stats, w0, w_pv, w_head, vecs))
    cost = pl.CostEstimate(
        flops=2 * B * (d_ob * hid + hid * 2 * hid + 2 * hid * a1p),
        transcendentals=B * (3 * hid + 2 * hid + 1),   # tanh + rsqrt passes
        bytes_accessed=4 * B * (d_ob + a1p) + param_bytes,
    )

    out = pl.pallas_call(
        catpolicy_kernel,
        out_shape=jax.ShapeDtypeStruct((B, a1p), jnp.float32),
        grid=grid,
        in_specs=[
            pl.BlockSpec((tb, d_ob), lambda i: (i, 0)),   # ob (batch-tiled)
            pl.BlockSpec(stats.shape, const),             # [mean; std]
            pl.BlockSpec(w0.shape, const),                # ShallowMLP weight
            pl.BlockSpec(w_pv.shape, const),              # fused [wp | wv]
            pl.BlockSpec(w_head.shape, const),            # block-diag head
            pl.BlockSpec(vecs.shape, const),              # packed bias/LN slab
        ],
        out_specs=pl.BlockSpec((tb, a1p), lambda i: (i, 0)),
        compiler_params=pltpu.CompilerParams(
            dimension_semantics=("parallel",),
            vmem_limit_bytes=32 * 1024 * 1024,
        ),
        cost_estimate=cost,
    )(ob, stats, w0, w_pv, w_head, vecs)

    logits = out[:, :ac_dim]
    value = out[:, ac_dim:ac_dim + 1]
    return logits, value


# ----------------- parameter construction / packing -----------------

def orthogonal_init(key, out_dim, in_dim, gain):
    """Deterministic orthogonal init (semantics of nn.init.orthogonal_)."""
    n = max(out_dim, in_dim)
    a = jax.random.normal(key, (n, n), dtype=jnp.float32)
    q, r = jnp.linalg.qr(a)
    q = q * jnp.sign(jnp.diagonal(r))[None, :]
    return (gain * q[:out_dim, :in_dim]).astype(jnp.float32)


def make_params(key, d_ob, hid, ac_dim, randomize_affine=True):
    """Unpacked parameters (torch-style semantics; weights pre-transposed to
    (in, out)).  Biases / LN affine get small random values so the packed
    kernel path is actually exercised (torch init uses zeros/ones)."""
    ks = jax.random.split(key, 16)
    g53 = 5.0 / 3.0

    def vec(k, n, base):
        if randomize_affine:
            return (base + 0.1 * jax.random.normal(k, (n,))).astype(jnp.float32)
        return jnp.full((n,), base, jnp.float32)

    return {
        # ShallowMLP (gain 5/3) + LayerNorm.
        "w0": orthogonal_init(ks[0], hid, d_ob, g53).T,
        "b0": vec(ks[5], hid, 0.0),
        "g0": vec(ks[6], hid, 1.0),
        "be0": vec(ks[7], hid, 0.0),
        # p_fc_stack (gain 5/3) + LayerNorm.
        "wp": orthogonal_init(ks[1], hid, hid, g53).T,
        "bp": vec(ks[8], hid, 0.0),
        "gp": vec(ks[9], hid, 1.0),
        "bep": vec(ks[10], hid, 0.0),
        # p_head (gain 0.01).
        "wph": orthogonal_init(ks[2], ac_dim, hid, 0.01).T,
        "bph": vec(ks[11], ac_dim, 0.0),
        # v_fc_stack (gain 5/3) + LayerNorm.
        "wv": orthogonal_init(ks[3], hid, hid, g53).T,
        "bv": vec(ks[12], hid, 0.0),
        "gv": vec(ks[13], hid, 1.0),
        "bev": vec(ks[14], hid, 0.0),
        # v_head (gain 0.01).
        "wvh": orthogonal_init(ks[4], 1, hid, 0.01).T,
        "bvh": vec(ks[15], 1, 0.0),
    }


def pack_params(mean, std, p, ac_dim):
    """One-time fusion/packing of parameters for the kernel (done at setup,
    outside the hot path)."""
    d_ob, hid = p["w0"].shape
    a1p = _pick_head_lanes(ac_dim)              # device-dependent output width
    w = max(2 * hid, a1p)

    stats = jnp.concatenate([mean, std], axis=0).astype(jnp.float32)   # (2, D_ob)
    w_pv = jnp.concatenate([p["wp"], p["wv"]], axis=1)                  # (H, 2H)

    # Block-diagonal fused head: [ wph  0 ] over policy lanes, [ 0  wvh ] over
    # value lanes; columns beyond A+1 are zero padding (must stay zero so the
    # padded output lanes stay zero).
    w_head = jnp.zeros((2 * hid, a1p), jnp.float32)
    w_head = w_head.at[:hid, :ac_dim].set(p["wph"])
    w_head = w_head.at[hid:, ac_dim].set(p["wvh"][:, 0])

    vecs = jnp.zeros((_N_VEC_ROWS, w), jnp.float32)
    vecs = vecs.at[_ROW_B0, :hid].set(p["b0"])
    vecs = vecs.at[_ROW_G0, :hid].set(p["g0"])
    vecs = vecs.at[_ROW_BE0, :hid].set(p["be0"])
    vecs = vecs.at[_ROW_BPV, :2 * hid].set(jnp.concatenate([p["bp"], p["bv"]]))
    vecs = vecs.at[_ROW_GPV, :2 * hid].set(jnp.concatenate([p["gp"], p["gv"]]))
    vecs = vecs.at[_ROW_BEPV, :2 * hid].set(jnp.concatenate([p["bep"], p["bev"]]))
    vecs = vecs.at[_ROW_BHEAD, :ac_dim].set(p["bph"])
    vecs = vecs.at[_ROW_BHEAD, ac_dim].set(p["bvh"][0])

    return stats, p["w0"], w_pv, w_head, vecs


def reference_forward(ob, mean, std, p):
    """Pure-JAX reference mirroring the PyTorch forward (unfused)."""
    x = jnp.clip((ob - mean) / std, -OB_CLAMP, OB_CLAMP)
    h = jnp.tanh(_layernorm(x @ p["w0"] + p["b0"], p["g0"], p["be0"]))
    pp = jnp.tanh(_layernorm(h @ p["wp"] + p["bp"], p["gp"], p["bep"]))
    logits = pp @ p["wph"] + p["bph"]
    vv = jnp.tanh(_layernorm(h @ p["wv"] + p["bv"], p["gv"], p["bev"]))
    value = vv @ p["wvh"] + p["bvh"]
    return logits, value


if __name__ == "__main__":
    B, D_OB, HID, AC_DIM = 8, 32, 32, 6

    key = jax.random.PRNGKey(0)
    k_ob, k_mean, k_std, k_par = jax.random.split(key, 4)

    ob = jax.random.normal(k_ob, (B, D_OB), dtype=jnp.float32) * 3.0
    # rms_obs.standardize equivalent: running mean and positive std.
    mean = jax.random.normal(k_mean, (1, D_OB), dtype=jnp.float32) * 0.1
    std = jax.random.uniform(k_std, (1, D_OB), dtype=jnp.float32,
                             minval=0.5, maxval=2.0)

    params = make_params(k_par, D_OB, HID, AC_DIM)
    packed = pack_params(mean, std, params, AC_DIM)

    fwd = jax.jit(functools.partial(catpolicy_forward, ac_dim=AC_DIM))
    logits, value = fwd(ob, packed)
    jax.block_until_ready((logits, value))

    ref_logits, ref_value = reference_forward(ob, mean, std, params)
    assert logits.shape == (B, AC_DIM) and value.shape == (B, 1)
    assert jnp.allclose(logits, ref_logits, atol=1e-5, rtol=1e-5)
    assert jnp.allclose(value, ref_value, atol=1e-5, rtol=1e-5)

    print("KERNEL_OK")
</pallas_src>

<mosaic_0001>
module attributes {stable_mosaic.version = 11 : i64} {
  func.func @catpolicy_kernel(%arg0: i32, %arg1: memref<8x32xf32, #tpu.memory_space<vmem>>, %arg2: memref<2x32xf32, #tpu.memory_space<vmem>>, %arg3: memref<32x32xf32, #tpu.memory_space<vmem>>, %arg4: memref<32x64xf32, #tpu.memory_space<vmem>>, %arg5: memref<64x128xf32, #tpu.memory_space<vmem>>, %arg6: memref<8x128xf32, #tpu.memory_space<vmem>>, %arg7: memref<8x128xf32, #tpu.memory_space<vmem>>) attributes {dimension_semantics = [#tpu.dimension_semantics<parallel>], iteration_bounds = array<i64: 1>, scalar_prefetch = 0 : i64, scratch_operands = 0 : i64, tpu.core_type = #tpu.core_type<tc>, window_params = [{transform_indices = @transform_0, window_bounds = array<i64: 8, 32>}, {pipeline_mode = #tpu.pipeline_mode<synchronous>, transform_indices = @transform_1, window_bounds = array<i64: 2, 32>}, {pipeline_mode = #tpu.pipeline_mode<synchronous>, transform_indices = @transform_2, window_bounds = array<i64: 32, 32>}, {pipeline_mode = #tpu.pipeline_mode<synchronous>, transform_indices = @transform_3, window_bounds = array<i64: 32, 64>}, {pipeline_mode = #tpu.pipeline_mode<synchronous>, transform_indices = @transform_4, window_bounds = array<i64: 64, 128>}, {pipeline_mode = #tpu.pipeline_mode<synchronous>, transform_indices = @transform_5, window_bounds = array<i64: 8, 128>}, {transform_indices = @transform_6, window_bounds = array<i64: 8, 128>}]} {
    %c0 = arith.constant 0 : index
    %c0_0 = arith.constant 0 : index
    %0 = vector.load %arg6[%c0, %c0_0] : memref<8x128xf32, #tpu.memory_space<vmem>>, vector<1x32xf32>
    %c1 = arith.constant 1 : index
    %c0_1 = arith.constant 0 : index
    %1 = vector.load %arg6[%c1, %c0_1] : memref<8x128xf32, #tpu.memory_space<vmem>>, vector<1x32xf32>
    %c2 = arith.constant 2 : index
    %c0_2 = arith.constant 0 : index
    %2 = vector.load %arg6[%c2, %c0_2] : memref<8x128xf32, #tpu.memory_space<vmem>>, vector<1x32xf32>
    %c3 = arith.constant 3 : index
    %c0_3 = arith.constant 0 : index
    %3 = vector.load %arg6[%c3, %c0_3] : memref<8x128xf32, #tpu.memory_space<vmem>>, vector<1x64xf32>
    %c4 = arith.constant 4 : index
    %c0_4 = arith.constant 0 : index
    %4 = vector.load %arg6[%c4, %c0_4] : memref<8x128xf32, #tpu.memory_space<vmem>>, vector<1x64xf32>
    %c5 = arith.constant 5 : index
    %c0_5 = arith.constant 0 : index
    %5 = vector.load %arg6[%c5, %c0_5] : memref<8x128xf32, #tpu.memory_space<vmem>>, vector<1x64xf32>
    %c6 = arith.constant 6 : index
    %c0_6 = arith.constant 0 : index
    %6 = vector.load %arg6[%c6, %c0_6] : memref<8x128xf32, #tpu.memory_space<vmem>>, vector<1x128xf32>
    %c0_7 = arith.constant 0 : index
    %c0_8 = arith.constant 0 : index
    %7 = vector.load %arg2[%c0_7, %c0_8] : memref<2x32xf32, #tpu.memory_space<vmem>>, vector<1x32xf32>
    %c1_9 = arith.constant 1 : index
    %c0_10 = arith.constant 0 : index
    %8 = vector.load %arg2[%c1_9, %c0_10] : memref<2x32xf32, #tpu.memory_space<vmem>>, vector<1x32xf32>
    %9 = tpu.reciprocal %8 : vector<1x32xf32> -> vector<1x32xf32>
    %c0_11 = arith.constant 0 : index
    %c0_12 = arith.constant 0 : index
    %10 = vector.load %arg1[%c0_11, %c0_12] : memref<8x32xf32, #tpu.memory_space<vmem>>, vector<8x32xf32>
    %11 = vector.broadcast %7 : vector<1x32xf32> to vector<8x32xf32>
    %12 = arith.subf %10, %11 : vector<8x32xf32>
    %13 = vector.broadcast %9 : vector<1x32xf32> to vector<8x32xf32>
    %14 = arith.mulf %12, %13 : vector<8x32xf32>
    %cst = arith.constant -5.000000e+00 : f32
    %cst_13 = arith.constant 5.000000e+00 : f32
    %15 = vector.broadcast %cst : f32 to vector<8x32xf32>
    %16 = arith.maximumf %15, %14 : vector<8x32xf32>
    %17 = vector.broadcast %cst_13 : f32 to vector<8x32xf32>
    %18 = arith.minimumf %17, %16 : vector<8x32xf32>
    %c0_14 = arith.constant 0 : index
    %c0_15 = arith.constant 0 : index
    %19 = vector.load %arg3[%c0_14, %c0_15] : memref<32x32xf32, #tpu.memory_space<vmem>>, vector<32x32xf32>
    %cst_16 = arith.constant dense<0.000000e+00> : vector<8x32xf32>
    %20 = tpu.matmul %18, %19, %cst_16 {dimension_numbers = #tpu.dot_dimension_numbers<[1], [0], [0], [1], [0, 0, 1, 1], [], []>} : vector<8x32xf32>, vector<32x32xf32>, vector<8x32xf32> -> vector<8x32xf32>
    %21 = vector.broadcast %0 : vector<1x32xf32> to vector<8x32xf32>
    %22 = arith.addf %20, %21 : vector<8x32xf32>
    %cst_17 = arith.constant dense<0.000000e+00> : vector<8xf32>
    %23 = vector.multi_reduction <add>, %22, %cst_17 [1] : vector<8x32xf32> to vector<8xf32>
    %24 = vector.shape_cast %23 : vector<8xf32> to vector<8x1xf32>
    %cst_18 = arith.constant 3.200000e+01 : f32
    %25 = vector.broadcast %cst_18 : f32 to vector<8x1xf32>
    %26 = arith.divf %24, %25 : vector<8x1xf32>
    %27 = vector.broadcast %26 : vector<8x1xf32> to vector<8x32xf32>
    %28 = arith.subf %22, %27 : vector<8x32xf32>
    %29 = arith.mulf %28, %28 : vector<8x32xf32>
    %cst_19 = arith.constant dense<0.000000e+00> : vector<8xf32>
    %30 = vector.multi_reduction <add>, %29, %cst_19 [1] : vector<8x32xf32> to vector<8xf32>
    %31 = vector.shape_cast %30 : vector<8xf32> to vector<8x1xf32>
    %cst_20 = arith.constant 3.200000e+01 : f32
    %32 = vector.broadcast %cst_20 : f32 to vector<8x1xf32>
    %33 = arith.divf %31, %32 : vector<8x1xf32>
    %cst_21 = arith.constant 9.99999974E-6 : f32
    %34 = vector.broadcast %cst_21 : f32 to vector<8x1xf32>
    %35 = arith.addf %33, %34 : vector<8x1xf32>
    %36 = math.rsqrt %35 : vector<8x1xf32>
    %37 = vector.broadcast %36 : vector<8x1xf32> to vector<8x32xf32>
    %38 = arith.mulf %28, %37 : vector<8x32xf32>
    %39 = vector.broadcast %1 : vector<1x32xf32> to vector<8x32xf32>
    %40 = arith.mulf %38, %39 : vector<8x32xf32>
    %41 = vector.broadcast %2 : vector<1x32xf32> to vector<8x32xf32>
    %42 = arith.addf %40, %41 : vector<8x32xf32>
    %43 = math.tanh %42 : vector<8x32xf32>
    %c0_22 = arith.constant 0 : index
    %c0_23 = arith.constant 0 : index
    %44 = vector.load %arg4[%c0_22, %c0_23] : memref<32x64xf32, #tpu.memory_space<vmem>>, vector<32x64xf32>
    %cst_24 = arith.constant dense<0.000000e+00> : vector<8x64xf32>
    %45 = tpu.matmul %43, %44, %cst_24 {dimension_numbers = #tpu.dot_dimension_numbers<[1], [0], [0], [1], [0, 0, 1, 1], [], []>} : vector<8x32xf32>, vector<32x64xf32>, vector<8x64xf32> -> vector<8x64xf32>
    %46 = vector.broadcast %3 : vector<1x64xf32> to vector<8x64xf32>
    %47 = arith.addf %45, %46 : vector<8x64xf32>
    %48 = tpu.iota {dimensions = array<i32: 1>} : vector<1x64xi32>
    %c32_i32 = arith.constant 32 : i32
    %49 = vector.broadcast %c32_i32 : i32 to vector<1x64xi32>
    %50 = arith.cmpi slt, %48, %49 : vector<1x64xi32>
    %cst_25 = arith.constant 0.000000e+00 : f32
    %51 = vector.shape_cast %50 : vector<1x64xi1> to vector<1x64xi1>
    %52 = vector.broadcast %51 : vector<1x64xi1> to vector<8x64xi1>
    %53 = vector.broadcast %cst_25 : f32 to vector<8x64xf32>
    %54 = arith.select %52, %47, %53 : vector<8x64xi1>, vector<8x64xf32>
    %cst_26 = arith.constant dense<0.000000e+00> : vector<8xf32>
    %55 = vector.multi_reduction <add>, %54, %cst_26 [1] : vector<8x64xf32> to vector<8xf32>
    %56 = vector.shape_cast %55 : vector<8xf32> to vector<8x1xf32>
    %cst_27 = arith.constant 3.125000e-02 : f32
    %57 = vector.broadcast %cst_27 : f32 to vector<8x1xf32>
    %58 = arith.mulf %56, %57 : vector<8x1xf32>
    %cst_28 = arith.constant 0.000000e+00 : f32
    %59 = vector.shape_cast %50 : vector<1x64xi1> to vector<1x64xi1>
    %60 = vector.broadcast %59 : vector<1x64xi1> to vector<8x64xi1>
    %61 = vector.broadcast %cst_28 : f32 to vector<8x64xf32>
    %62 = arith.select %60, %61, %47 : vector<8x64xi1>, vector<8x64xf32>
    %cst_29 = arith.constant dense<0.000000e+00> : vector<8xf32>
    %63 = vector.multi_reduction <add>, %62, %cst_29 [1] : vector<8x64xf32> to vector<8xf32>
    %64 = vector.shape_cast %63 : vector<8xf32> to vector<8x1xf32>
    %cst_30 = arith.constant 3.125000e-02 : f32
    %65 = vector.broadcast %cst_30 : f32 to vector<8x1xf32>
    %66 = arith.mulf %64, %65 : vector<8x1xf32>
    %67 = vector.shape_cast %50 : vector<1x64xi1> to vector<1x64xi1>
    %68 = vector.broadcast %67 : vector<1x64xi1> to vector<8x64xi1>
    %69 = vector.shape_cast %58 : vector<8x1xf32> to vector<8x1xf32>
    %70 = vector.broadcast %69 : vector<8x1xf32> to vector<8x64xf32>
    %71 = vector.shape_cast %66 : vector<8x1xf32> to vector<8x1xf32>
    %72 = vector.broadcast %71 : vector<8x1xf32> to vector<8x64xf32>
    %73 = arith.select %68, %70, %72 : vector<8x64xi1>, vector<8x64xf32>
    %74 = arith.subf %47, %73 : vector<8x64xf32>
    %75 = arith.mulf %74, %74 : vector<8x64xf32>
    %cst_31 = arith.constant 0.000000e+00 : f32
    %76 = vector.shape_cast %50 : vector<1x64xi1> to vector<1x64xi1>
    %77 = vector.broadcast %76 : vector<1x64xi1> to vector<8x64xi1>
    %78 = vector.broadcast %cst_31 : f32 to vector<8x64xf32>
    %79 = arith.select %77, %75, %78 : vector<8x64xi1>, vector<8x64xf32>
    %cst_32 = arith.constant dense<0.000000e+00> : vector<8xf32>
    %80 = vector.multi_reduction <add>, %79, %cst_32 [1] : vector<8x64xf32> to vector<8xf32>
    %81 = vector.shape_cast %80 : vector<8xf32> to vector<8x1xf32>
    %cst_33 = arith.constant 3.125000e-02 : f32
    %82 = vector.broadcast %cst_33 : f32 to vector<8x1xf32>
    %83 = arith.mulf %81, %82 : vector<8x1xf32>
    %cst_34 = arith.constant 0.000000e+00 : f32
    %84 = vector.shape_cast %50 : vector<1x64xi1> to vector<1x64xi1>
    %85 = vector.broadcast %84 : vector<1x64xi1> to vector<8x64xi1>
    %86 = vector.broadcast %cst_34 : f32 to vector<8x64xf32>
    %87 = arith.select %85, %86, %75 : vector<8x64xi1>, vector<8x64xf32>
    %cst_35 = arith.constant dense<0.000000e+00> : vector<8xf32>
    %88 = vector.multi_reduction <add>, %87, %cst_35 [1] : vector<8x64xf32> to vector<8xf32>
    %89 = vector.shape_cast %88 : vector<8xf32> to vector<8x1xf32>
    %cst_36 = arith.constant 3.125000e-02 : f32
    %90 = vector.broadcast %cst_36 : f32 to vector<8x1xf32>
    %91 = arith.mulf %89, %90 : vector<8x1xf32>
    %92 = vector.shape_cast %50 : vector<1x64xi1> to vector<1x64xi1>
    %93 = vector.broadcast %92 : vector<1x64xi1> to vector<8x64xi1>
    %94 = vector.shape_cast %83 : vector<8x1xf32> to vector<8x1xf32>
    %95 = vector.broadcast %94 : vector<8x1xf32> to vector<8x64xf32>
    %96 = vector.shape_cast %91 : vector<8x1xf32> to vector<8x1xf32>
    %97 = vector.broadcast %96 : vector<8x1xf32> to vector<8x64xf32>
    %98 = arith.select %93, %95, %97 : vector<8x64xi1>, vector<8x64xf32>
    %cst_37 = arith.constant 9.99999974E-6 : f32
    %99 = vector.broadcast %cst_37 : f32 to vector<8x64xf32>
    %100 = arith.addf %98, %99 : vector<8x64xf32>
    %101 = math.rsqrt %100 : vector<8x64xf32>
    %102 = arith.mulf %74, %101 : vector<8x64xf32>
    %103 = vector.broadcast %4 : vector<1x64xf32> to vector<8x64xf32>
    %104 = arith.mulf %102, %103 : vector<8x64xf32>
    %105 = vector.broadcast %5 : vector<1x64xf32> to vector<8x64xf32>
    %106 = arith.addf %104, %105 : vector<8x64xf32>
    %107 = math.tanh %106 : vector<8x64xf32>
    %c0_38 = arith.constant 0 : index
    %c0_39 = arith.constant 0 : index
    %108 = vector.load %arg5[%c0_38, %c0_39] : memref<64x128xf32, #tpu.memory_space<vmem>>, vector<64x128xf32>
    %cst_40 = arith.constant dense<0.000000e+00> : vector<8x128xf32>
    %109 = tpu.matmul %107, %108, %cst_40 {dimension_numbers = #tpu.dot_dimension_numbers<[1], [0], [0], [1], [0, 0, 1, 1], [], []>} : vector<8x64xf32>, vector<64x128xf32>, vector<8x128xf32> -> vector<8x128xf32>
    %110 = vector.broadcast %6 : vector<1x128xf32> to vector<8x128xf32>
    %111 = arith.addf %109, %110 : vector<8x128xf32>
    %c0_41 = arith.constant 0 : index
    %c0_42 = arith.constant 0 : index
    %112 = vector.load %arg7[%c0_41, %c0_42] : memref<8x128xf32, #tpu.memory_space<vmem>>, vector<8x128xf32>
    tpu.vector_store %arg7[%c0_41, %c0_42], %111 {strides = array<i32>} : memref<8x128xf32, #tpu.memory_space<vmem>>, vector<8x128xf32>,
    return
  }
  func.func @transform_0(%arg0: i32) -> (i32, i32) {
    %c0_i32 = arith.constant 0 : i32
    %c0_i32_0 = arith.constant 0 : i32
    return %arg0, %c0_i32 : i32, i32
  }
  func.func @transform_1(%arg0: i32) -> (i32, i32) {
    %c0_i32 = arith.constant 0 : i32
    %c0_i32_0 = arith.constant 0 : i32
    %c0_i32_1 = arith.constant 0 : i32
    return %c0_i32, %c0_i32_0 : i32, i32
  }
  func.func @transform_2(%arg0: i32) -> (i32, i32) {
    %c0_i32 = arith.constant 0 : i32
    %c0_i32_0 = arith.constant 0 : i32
    %c0_i32_1 = arith.constant 0 : i32
    return %c0_i32, %c0_i32_0 : i32, i32
  }
  func.func @transform_3(%arg0: i32) -> (i32, i32) {
    %c0_i32 = arith.constant 0 : i32
    %c0_i32_0 = arith.constant 0 : i32
    %c0_i32_1 = arith.constant 0 : i32
    return %c0_i32, %c0_i32_0 : i32, i32
  }
  func.func @transform_4(%arg0: i32) -> (i32, i32) {
    %c0_i32 = arith.constant 0 : i32
    %c0_i32_0 = arith.constant 0 : i32
    %c0_i32_1 = arith.constant 0 : i32
    return %c0_i32, %c0_i32_0 : i32, i32
  }
  func.func @transform_5(%arg0: i32) -> (i32, i32) {
    %c0_i32 = arith.constant 0 : i32
    %c0_i32_0 = arith.constant 0 : i32
    %c0_i32_1 = arith.constant 0 : i32
    return %c0_i32, %c0_i32_0 : i32, i32
  }
  func.func @transform_6(%arg0: i32) -> (i32, i32) {
    %c0_i32 = arith.constant 0 : i32
    %c0_i32_0 = arith.constant 0 : i32
    return %arg0, %c0_i32 : i32, i32
  }
}

</mosaic_0001>

<bundles_post_ra>
// kernel: catpolicy_forward.1
= control target key start
LH: loop header
LB: loop body
LE: loop exit
PB: predicated region body
PF: predicated region fallthrough
CT: control target
= control target key end

     0   :  { %11 = vsyncpa [#allocation3], 0  ;;  %s585_s0 = inlined_call_operand.hbm [shape: f32[8,32], index: 0, kind: input, shape index: {}]   ;;  %s586_s1 = inlined_call_operand.hbm [shape: f32[2,32], index: 1, kind: input, shape index: {}]   ;;  %s587_s2 = inlined_call_operand.hbm [shape: f32[32,32], index: 2, kind: input, shape index: {}]   ;;  %s588_s3 = inlined_call_operand.hbm [shape: f32[32,64], index: 3, kind: input, shape index: {}]   ;;  %s589_s4 = inlined_call_operand.hbm [shape: f32[64,128], index: 4, kind: input, shape index: {}]   ;;  %s590_s5 = inlined_call_operand.hbm [shape: f32[8,128], index: 5, kind: input, shape index: {}]   ;;  %s591_s6 = inlined_call_operand.vmem [shape: f32[8,128], index: 6, kind: output, shape index: {}]  }
   0x1   :  { %12 = vsyncpa [#allocation5], 0 }
   0x2   :  { %13 = vsyncpa [#allocation8], 0  ;;  %s31_s23 = sshll.u32 %s586_s1, 4  ;;  %s32_s23 = int_to_ptr.hbm [resolvable:$true] %s31_s23 }
   0x3   :  { %14 = vsyncpa [#allocation11], 0  ;;  %s505_s24 = smov [#allocation4]   ;;  %s54_s28 = sshll.u32 %s588_s3, 4  ;;  %s55_s28 = int_to_ptr.hbm [resolvable:$true] %s54_s28 }
   0x4   :  { %s33_s25 = sshll.u32 %s505_s24, 4  ;;  %s506_s29 = smov [#allocation7]   ;;  %s34_s25 = int_to_ptr.vmem [resolvable:$true] %s33_s25 }
   0x5   :  { %36 = dma.hbm_to_vmem [thread:$0]  %s32_s23, 32, %s34_s25, [#allocation5]  }
   0x6   :  { %s56_s30 = sshll.u32 %s506_s29, 4  ;;  %s20_s9 = sshll.u32 %s585_s0, 4  ;;  %s57_s30 = int_to_ptr.vmem [resolvable:$true] %s56_s30  ;;  %s21_s9 = int_to_ptr.hbm [resolvable:$true] %s20_s9 }
   0x7   :  { %s507_s1 = smov 128   ;;  %s508_s10 = smov 8  }
   0x8   :  { %62 = dma.hbm_to_vmem [thread:$0]  %s55_s28, 512, %s57_s30, [#allocation8], %s507_s1, %s507_s1, %s508_s10  }
   0x9   :  { %s41_s13 = sshll.u32 %s587_s2, 4  ;;  %s509_s14 = smov [#allocation2]   ;;  %s42_s13 = int_to_ptr.hbm [resolvable:$true] %s41_s13 }
   0xa   :  { %s22_s15 = sshll.u32 %s509_s14, 4  ;;  %s510_s3 = smov [#allocation6]   ;;  %s23_s15 = int_to_ptr.vmem [resolvable:$true] %s22_s15 }
   0xb   :  { %25 = dma.hbm_to_vmem [thread:$0]  %s21_s9, 128, %s23_s15, [#allocation3]  }
   0xc   :  { %s43_s16 = sshll.u32 %s510_s3, 4  ;;  %s67_s0 = sshll.u32 %s589_s4, 4  ;;  %s44_s16 = int_to_ptr.vmem [resolvable:$true] %s43_s16  ;;  %s68_s0 = int_to_ptr.hbm [resolvable:$true] %s67_s0 }
   0xd   :  { %49 = dma.hbm_to_vmem [thread:$0]  %s42_s13, 512, %s44_s16, [#allocation5], %s507_s1, %s507_s1, %s508_s10  }
   0xe   :  { %s81_s21 = sshll.u32 %s590_s5, 4  ;;  %s511_s22 = smov [#allocation9]   ;;  %s82_s21 = int_to_ptr.hbm [resolvable:$true] %s81_s21 }
   0xf   :  { %s69_s2 = sshll.u32 %s511_s22, 4  ;;  %s512_s23 = smov [#allocation10]   ;;  %s70_s2 = int_to_ptr.vmem [resolvable:$true] %s69_s2 }
  0x10   :  { %75 = dma.hbm_to_vmem [thread:$0]  %s68_s0, 1024, %s70_s2, [#allocation8], %s507_s1, %s507_s1, %s508_s10  }
  0x11   :  { %s83_s24 = sshll.u32 %s512_s23, 4  ;;  %s84_s24 = int_to_ptr.vmem [resolvable:$true] %s83_s24 }
  0x12   :  { %86 = dma.hbm_to_vmem [thread:$0]  %s82_s21, 128, %s84_s24, [#allocation11]  }
  0x13   :  { %497 = dma.done.wait [#allocation3], 128  }
  0x14   :  { %498 = vsyncadd [#allocation3], 4294967168 }
  0x15   :  { %499 = dma.done.wait [#allocation5], 544  }
  0x16   :  { %500 = vsyncadd [#allocation5], 4294966752 }
  0x17   :  { %501 = dma.done.wait [#allocation8], 1536  }
  0x18   :  { %502 = vsyncadd [#allocation8], 4294965760 }
  0x19   :  { %503 = dma.done.wait [#allocation11], 128  }
  0x1a   :  { %504 = vsyncadd [#allocation11], 4294967168  ;;  %v144_v0 = vld [vmem:[#allocation6 + $0x18] sm:$0xff]  ;;  %v143_v1 = vld [vmem:[#allocation6 + $0x10] sm:$0xff]  ;;  %vm146_vm4 = vcmask 261120   ;;  %v513_v25 = vmov 32.0   ;;  %v232_v57 = vlaneseq }
  0x1b   :  { %162 = vmatpush.msra.mxu0 %v144_v0  ;;  %v119_v2 = vld [vmem:[#allocation4 + $0x1] sm:$0x1]  ;;  %v142_v3 = vld [vmem:[#allocation6 + $0x8] sm:$0xff]  ;;  %v141_v4 = vld [vmem:[#allocation6] sm:$0xff]  ;;  %vm238_vm10 = vcmask 523264  }
  0x1c   :  { %341 = vrcp.f32 %v119_v2  ;;  %v131_v7 = vand.u32 2147483648, %v119_v2  ;;  %vm125_vm0 = vweird.f32 %v119_v2  ;;  %v129_v9 = vand.u32 2147483647, %v119_v2  ;;  %v333_v11 = vld [vmem:[#allocation4] ss:$0 sm:$0xff]  ;;  %v134_v13 = vld [vmem:[#allocation2] sm:$0xff] }
  0x1d   :  { %163 = vmatpush.msra.mxu0 %v143_v1  ;;  %v136_v16 = vsub.f32 %v134_v13, %v333_v11  ;;  %v334_v21 = vld [vmem:[#allocation10] ss:$0 sm:$0xff]  ;;  %343 = vrcp.f32 %v513_v25  ;;  %v207_v37 = vld [vmem:[#allocation7 + $0x18] sm:$0xff]  ;;  %v206_v38 = vld [vmem:[#allocation7 + $0x10] sm:$0xff]  ;;  %v233_v58 = vand.u32 127, %v232_v57 }
  0x1e   :  { %v132_v12 = vor.u32 1.1754944e-38, %v131_v7  ;;  %vm130_vm3 = vcmp.eq.f32.partialorder %v129_v9, 8.507059e+37  ;;  %224 = vmatpush.msra.mxu1 %v207_v37  ;;  %v205_v39 = vld [vmem:[#allocation7 + $0x8] sm:$0xff]  ;;  %v204_v41 = vld [vmem:[#allocation7] sm:$0xff]  ;;  %v286_v13 = vld [vmem:[#allocation9 + $0x38] sm:$0xff] }
  0x1f   :  { %164 = vmatpush.msra.mxu0 %v142_v3  ;;  %v335_v50 = vld [vmem:[#allocation10 + $0x1] ss:$0 sm:$0xff]  ;;  %v336_v52 = vld [vmem:[#allocation10 + $0x2] ss:$0 sm:$0xff]  ;;  %v337_v59 = vld [vmem:[#allocation10 + $0x3] ss:$0 sm:$0xff]  ;;  %299 = vmatpush.msra.mxu2 %v286_v13 }
  0x20   :  { %225 = vmatpush.msra.mxu1 %v206_v38  ;;  %vm234_vm9 = vcmp.lt.s32.totalorder %v233_v58, 32 }
  0x21   :  { %165 = vmatpush.msra.mxu0 %v141_v4 }
  0x22   :  { %v342_v5 = vpop.eup %341  ;;  %226 = vmatpush.msra.mxu1 %v205_v39 }
  0x23   :  { %v121_v6 = vmul.f32 %v342_v5, %v119_v2  ;;  %vm126_vm1 = vweird.f32 %v342_v5  ;;  %v344_v26 = vpop.eup %343 }
  0x24   :  { %vm127_vm2 = vmor %vm125_vm0, %vm126_vm1  ;;  %v174_v27 = vmul.f32 32.0, %v344_v26  ;;  %vm178_vm5 = vweird.f32 %v344_v26  ;;  %227 = vmatpush.msra.mxu1 %v204_v41 }
  0x25   :  { %v122_v8 = vsub.f32 1.0, %v121_v6 }
  0x26   :  { %v175_v28 = vsub.f32 1.0, %v174_v27 }
  0x27   :  { %v123_v10 = vmul.f32 %v342_v5, %v122_v8 }
  0x28   :  { %v176_v29 = vmul.f32 %v344_v26, %v175_v28 }
  0x29   :  { %v124_v14 = vadd.f32 %v342_v5, %v123_v10 }
  0x2a   :  { %v177_v30 = vadd.f32 %v344_v26, %v176_v29 }
  0x2b   :  { %v128_v15 = vsel %vm127_vm2, %v342_v5, %v124_v14  ;;  %v285_v14 = vld [vmem:[#allocation9 + $0x30] sm:$0xff] }
  0x2c   :  { %v133_v17 = vsel %vm130_vm3, %v132_v12, %v128_v15  ;;  %v179_v31 = vsel %vm178_vm5, %v344_v26, %v177_v30  ;;  %300 = vmatpush.msra.mxu2 %v285_v14 }
  0x2d   :  { %v137_v18 = vperm.slane %v133_v17, 0  ;;  %v283_v17 = vld [vmem:[#allocation9 + $0x20] sm:$0xff] }
  0x2f   :  { %v138_v19 = vmul.f32 %v137_v18, %v136_v16  ;;  %v284_v16 = vld [vmem:[#allocation9 + $0x28] sm:$0xff]  ;;  %v282_v18 = vld [vmem:[#allocation9 + $0x18] sm:$0xff] }
  0x30   :  { %301 = vmatpush.msra.mxu2 %v284_v16 }
  0x31   :  { %v320_v20 = vclamps-f32 %v138_v19, 5.0  ;;  %v281_v19 = vld [vmem:[#allocation9 + $0x10] sm:$0xff] }
  0x32   :  { %302 = vmatpush.msra.mxu2 %v283_v17 }
  0x33   :  { %321 = vmatmul.msk.f32.vlgmr.msra.gmra.mxu0 %vm146_vm4, %v320_v20  ;;  %v280_v20 = vld [vmem:[#allocation9 + $0x8] sm:$0xff] }
  0x34   :  { %303 = vmatpush.msra.mxu2 %v282_v18 }
  0x36   :  { %304 = vmatpush.msra.mxu2 %v281_v19 }
  0x38   :  { %305 = vmatpush.msra.mxu2 %v280_v20 }
  0xb0   :  { %v167_v22 = vpop.f32.mrf.mxu0 }
  0xb1   :  { %v168_v23 = vadd.f32 %v334_v21, %v167_v22 }
  0xb3   :  { %v170_v24 = vsel %vm146_vm4, %v168_v23, 0.0 }
  0xb4   :  { %171 = vadd.xlane.f32.xlu0 %v170_v24  ;;  %v279_v24 = vld [vmem:[#allocation9] sm:$0xff] }
  0xb5   :  { %306 = vmatpush.msra.mxu2 %v279_v24 }
 0x127   :  { %v172_v32 = vpop.xlane.xlu0 %171 }
 0x128   :  { %v180_v33 = vmul.f32 %v179_v31, %v172_v32 }
 0x12a   :  { %v181_v34 = vsub.f32 %v168_v23, %v180_v33  ;;  %v338_v33 = vld [vmem:[#allocation10 + $0x4] ss:$0 sm:$0xff] }
 0x12c   :  { %v182_v35 = vmul.f32 %v181_v34, %v181_v34 }
 0x12e   :  { %v183_v36 = vsel %vm146_vm4, %v182_v35, 0.0 }
 0x12f   :  { %184 = vadd.xlane.f32.xlu0 %v183_v36  ;;  %v339_v36 = vld [vmem:[#allocation10 + $0x5] ss:$0 sm:$0xff] }
 0x1a2   :  { %v185_v40 = vpop.xlane.xlu0 %184 }
 0x1a3   :  { %v186_v42 = vmul.f32 %v185_v40, %v179_v31  ;;  %v340_v40 = vld [vmem:[#allocation10 + $0x6] ss:$0 sm:$0xff] }
 0x1a5   :  { %v187_v43 = vadd.f32 1e-05, %v186_v42 }
 0x1a7   :  { %345 = vrsqrt.f32 %v187_v43  ;;  %vm194_vm7 = vweird.f32 %v187_v43 }
 0x1ad   :  { %v346_v44 = vpop.eup %345 }
 0x1ae   :  { %v189_v45 = vmul.f32 %v346_v44, %v187_v43  ;;  %vm195_vm6 = vweird.f32 %v346_v44 }
 0x1af   :  { %vm196_vm8 = vmor %vm194_vm7, %vm195_vm6 }
 0x1b0   :  { %v190_v46 = vmul.f32 %v346_v44, %v189_v45 }
 0x1b2   :  { %v191_v47 = vmul.f32 0.5, %v190_v46 }
 0x1b4   :  { %v192_v48 = vsub.f32 1.5, %v191_v47 }
 0x1b6   :  { %v193_v49 = vmul.f32 %v346_v44, %v192_v48 }
 0x1b8   :  { %v197_v51 = vsel %vm196_vm8, %v346_v44, %v193_v49 }
 0x1b9   :  { %v198_v53 = vmul.f32 %v197_v51, %v181_v34 }
 0x1bb   :  { %v200_v54 = vmul.f32 %v335_v50, %v198_v53 }
 0x1bd   :  { %v202_v55 = vadd.f32 %v336_v52, %v200_v54 }
 0x1bf   :  { %347 = vtanh.f32 %v202_v55 }
 0x1c5   :  { %v348_v56 = vpop.eup %347 }
 0x1c6   :  { %322 = vmatmul.msk.f32.vlgmr.msra.gmra.mxu1 %vm146_vm4, %v348_v56 }
 0x243   :  { %v229_v60 = vpop.f32.mrf.mxu1 }
 0x244   :  { %v230_v61 = vadd.f32 %v337_v59, %v229_v60 }
 0x246   :  { %v237_v62 = vsel %vm234_vm9, %v230_v61, 0.0  ;;  %v243_v0 = vsel %vm234_vm9, 0.0, %v230_v61 }
 0x247   :  { %v239_v63 = vsel %vm238_vm10, %v237_v62, 0.0  ;;  %v244_v1 = vsel %vm238_vm10, %v243_v0, 0.0 }
 0x248   :  { %240 = vadd.xlane.f32.xlu1 %v239_v63 }
 0x250   :  { %245 = vadd.xlane.f32.xlu1 %v244_v1 }
 0x2bb   :  { %v241_v2 = vpop.xlane.xlu1 %240 }
 0x2bc   :  { %v242_v4 = vmul.f32 0.03125, %v241_v2 }
 0x2c3   :  { %v246_v3 = vpop.xlane.xlu1 %245 }
 0x2c4   :  { %v247_v5 = vmul.f32 0.03125, %v246_v3 }
 0x2c6   :  { %v248_v6 = vsel %vm234_vm9, %v242_v4, %v247_v5 }
 0x2c7   :  { %v249_v7 = vsub.f32 %v230_v61, %v248_v6 }
 0x2c9   :  { %v250_v8 = vmul.f32 %v249_v7, %v249_v7 }
 0x2cb   :  { %v251_v9 = vsel %vm234_vm9, %v250_v8, 0.0  ;;  %v256_v11 = vsel %vm234_vm9, 0.0, %v250_v8 }
 0x2cc   :  { %v252_v10 = vsel %vm238_vm10, %v251_v9, 0.0  ;;  %v257_v12 = vsel %vm238_vm10, %v256_v11, 0.0 }
 0x2cd   :  { %253 = vadd.xlane.f32.xlu2 %v252_v10 }
 0x2d5   :  { %258 = vadd.xlane.f32.xlu2 %v257_v12 }
 0x340   :  { %v254_v15 = vpop.xlane.xlu2 %253 }
 0x341   :  { %v255_v22 = vmul.f32 0.03125, %v254_v15 }
 0x348   :  { %v259_v21 = vpop.xlane.xlu2 %258 }
 0x349   :  { %v260_v23 = vmul.f32 0.03125, %v259_v21 }
 0x34b   :  { %v261_v25 = vsel %vm234_vm9, %v255_v22, %v260_v23 }
 0x34c   :  { %v262_v26 = vadd.f32 1e-05, %v261_v25 }
 0x34e   :  { %349 = vrsqrt.f32 %v262_v26  ;;  %vm269_vm12 = vweird.f32 %v262_v26 }
 0x354   :  { %v350_v27 = vpop.eup %349 }
 0x355   :  { %v264_v28 = vmul.f32 %v350_v27, %v262_v26  ;;  %vm270_vm11 = vweird.f32 %v350_v27 }
 0x356   :  { %vm271_vm13 = vmor %vm269_vm12, %vm270_vm11 }
 0x357   :  { %v265_v29 = vmul.f32 %v350_v27, %v264_v28 }
 0x359   :  { %v266_v30 = vmul.f32 0.5, %v265_v29 }
 0x35b   :  { %v267_v31 = vsub.f32 1.5, %v266_v30 }
 0x35d   :  { %v268_v32 = vmul.f32 %v350_v27, %v267_v31 }
 0x35f   :  { %v272_v34 = vsel %vm271_vm13, %v350_v27, %v268_v32 }
 0x360   :  { %v273_v35 = vmul.f32 %v272_v34, %v249_v7 }
 0x362   :  { %v275_v37 = vmul.f32 %v338_v33, %v273_v35 }
 0x364   :  { %v277_v38 = vadd.f32 %v339_v36, %v275_v37 }
 0x366   :  { %351 = vtanh.f32 %v277_v38 }
 0x36c   :  { %v352_v39 = vpop.eup %351 }
 0x36d   :  { %323 = vmatmul.msk.f32.vlgmr.msra.gmra.mxu2 %vm238_vm10, %v352_v39 }
 0x3f0   :  { %v308_v41 = vpop.f32.mrf.mxu2 }
 0x3f1   :  { %v309_v42 = vadd.f32 %v340_v40, %v308_v41 }
 0x3f3   :  { %311 = vst [vmem:[%s591_s6] sm:$0xff] %v309_v42 }
 0x3f4   :  { %316 = vsyncpa [#allocation3], 1 }
 0x3f5   :  { %317 = vsyncpa [#allocation5], 1 }
 0x3f6   :  { %318 = vsyncpa [#allocation8], 1 }
 0x3f7   :  { %319 = vsyncpa [#allocation11], 1 }

</bundles_post_ra>
